<compile_context>
chip_gen: v7x
topology: tpu7x:2x2x1
jax: 0.10.0
libtpu: 0.0.40
codegen_flags: <defaults>
</compile_context>

<pallas_src>
import functools

import jax
import jax.numpy as jnp
from jax.experimental import pallas as pl
from jax.experimental.pallas import tpu as pltpu


def _disc_kernel(x_ref, h0_ref, c0_ref, wih_ref, whh_ref, b_ref, head_ref, out_ref,
                 *, seq_len, batch_pad, hidden_dim):
    S, B, H = seq_len, batch_pad, hidden_dim

    # (1) Batched, normalization-folded input projection for all time steps:
    #     (S*B, I)bf16 @ (I, 4H)bf16 -> f32, bias added once (not per step).
    xp = (jnp.dot(x_ref[...], wih_ref[...], preferred_element_type=jnp.float32)
          + b_ref[...])                                       # (S*B, 4H) f32

    whh = whh_ref[...]                                        # (H, 4H) bf16, loop-invariant
    h = h0_ref[...]                                           # (B, H) f32
    c = c0_ref[...]                                           # (B, H) f32

    # (2) Recurrence, fully unrolled at trace time (S is a static Python int).
    #     B == 8 (sublane-padded) -> every xp slice is an aligned whole-vreg read.
    for t in range(S):
        gates = xp[t * B:(t + 1) * B, :] + jnp.dot(
            h.astype(whh.dtype), whh,
            preferred_element_type=jnp.float32)               # (B, 4H) f32
        sig = jax.nn.sigmoid(gates)                           # one full-vreg EUP pass
        th = jnp.tanh(gates)                                  # one full-vreg EUP pass
        i_g = sig[:, 0 * H:1 * H]
        f_g = sig[:, 1 * H:2 * H]
        g_g = th[:, 2 * H:3 * H]
        o_g = sig[:, 3 * H:4 * H]
        c = f_g * c + i_g * g_g
        h = o_g * jnp.tanh(c)

    # (3) Final head: VPU multiply-add + lane reduction (bias folded into head row 1).
    logits = jnp.sum(h * head_ref[0:1, :] + head_ref[1:2, :],
                     axis=-1, keepdims=True)                  # (B, 1)
    out_ref[...] = jax.nn.sigmoid(logits).astype(out_ref.dtype)


def fold_params(params, mean, std):
    """One-time parameter folding (call at parameter-load time, not per forward).

    Folds (x - mean)/std into W_ih / bias:
      xn @ W_ih^T + b == x @ (W_ih^T / std) + (b - (mean/std) * sum_rows(W_ih^T))
    NOTE: assumes scalar mean/std; per-feature stats would need mean_vec @ W_ih^T.
    """
    H = params["weight_hh"].shape[1]
    inv_std = jnp.float32(1.0 / std)
    wih_t = params["weight_ih"].T.astype(jnp.float32)         # (I, 4H)
    bias = (params["bias_ih"] + params["bias_hh"]
            - (jnp.float32(mean) * inv_std) * jnp.sum(wih_t, axis=0)).reshape(1, 4 * H)
    head = jnp.concatenate(
        [params["linear_w"].reshape(1, H).astype(jnp.float32),
         jnp.full((1, H), params["linear_b"][0] / H, jnp.float32)], axis=0)  # (2, H)
    return {
        "wih": (wih_t * inv_std).astype(jnp.bfloat16),        # (I, 4H)  MXU operand
        "whh": params["weight_hh"].T.astype(jnp.bfloat16),    # (H, 4H)  MXU operand
        "bias": bias.astype(jnp.float32),                     # (1, 4H)
        "head": head,                                         # (2, H)
    }


@jax.jit
def discriminator_forward(x, h0, c0, folded):
    """x: (S, B, I) f32;  h0, c0: (1, B, H) f32;  returns (1, B, 1) f32."""
    S, B, I = x.shape
    H = h0.shape[-1]
    B_pad = max(8, -(-B // 8) * 8)                            # round batch up to sublane count
    pad = B_pad - B

    # Pad batch to the 8-row sublane (free: these tiles are padded to 8 rows anyway),
    # squeeze the leading 1 off h0/c0, and cast MXU operands to bf16.
    x_flat = jnp.pad(x, ((0, 0), (0, pad), (0, 0))).reshape(S * B_pad, I).astype(jnp.bfloat16)
    h8 = jnp.pad(h0[0], ((0, pad), (0, 0))).astype(jnp.float32)
    c8 = jnp.pad(c0[0], ((0, pad), (0, 0))).astype(jnp.float32)

    kernel = functools.partial(_disc_kernel, seq_len=S, batch_pad=B_pad, hidden_dim=H)
    vmem = pl.BlockSpec(memory_space=pltpu.MemorySpace.VMEM)

    # Single grid-less invocation; total resident footprint (<50 KB) is far below
    # VMEM limits on v5e/v6e/v7x, so everything stays resident for the whole call.
    out = pl.pallas_call(
        kernel,
        out_shape=jax.ShapeDtypeStruct((B_pad, 1), jnp.float32),
        in_specs=[vmem,    # x_flat (S*B_pad, I) bf16
                  vmem,    # h0     (B_pad, H)   f32
                  vmem,    # c0     (B_pad, H)   f32
                  vmem,    # W_ih^T / std  (I, 4H) bf16
                  vmem,    # W_hh^T        (H, 4H) bf16
                  vmem,    # folded bias   (1, 4H) f32
                  vmem],   # head (w; b/H) (2, H)  f32
        out_specs=vmem,
    )(x_flat, h8, c8, folded["wih"], folded["whh"], folded["bias"], folded["head"])

    return out[:B].reshape(1, B, 1)


# ---------------------------------------------------------------------------
# Pure-JAX reference (mirrors PyTorch nn.LSTM + Linear + Sigmoid semantics).
# ---------------------------------------------------------------------------
def discriminator_ref(x, h0, c0, params, mean, std):
    S, B, I = x.shape
    H = h0.shape[-1]
    xn = (x - mean) / std
    h, c = h0[0], c0[0]
    wih, whh = params["weight_ih"], params["weight_hh"]
    b = params["bias_ih"] + params["bias_hh"]
    for t in range(S):
        gates = xn[t] @ wih.T + h @ whh.T + b
        i_g = jax.nn.sigmoid(gates[:, 0 * H:1 * H])
        f_g = jax.nn.sigmoid(gates[:, 1 * H:2 * H])
        g_g = jnp.tanh(gates[:, 2 * H:3 * H])
        o_g = jax.nn.sigmoid(gates[:, 3 * H:4 * H])
        c = f_g * c + i_g * g_g
        h = o_g * jnp.tanh(c)
    logits = h @ params["linear_w"].T + params["linear_b"]
    return jax.nn.sigmoid(logits)[None]                       # (1, B, 1)


def xavier_normal(key, shape):
    fan_out, fan_in = shape
    std = (2.0 / (fan_in + fan_out)) ** 0.5
    return std * jax.random.normal(key, shape, jnp.float32)


if __name__ == "__main__":
    # cfg.l = 6, cfg.pred = 2  ->  input_size = 8;  cfg.hid_d = 32
    SEQ, BATCH, L, PRED, HID = 8, 2, 6, 2, 32
    IN = L + PRED
    mean, std = 0.5, 2.0

    key = jax.random.PRNGKey(0)
    k = jax.random.split(key, 8)
    params = {
        "weight_ih": xavier_normal(k[0], (4 * HID, IN)),           # nn.init.xavier_normal_
        "weight_hh": xavier_normal(k[1], (4 * HID, HID)),          # nn.init.xavier_normal_
        "bias_ih": jax.random.uniform(k[2], (4 * HID,), jnp.float32,
                                      -1.0 / HID ** 0.5, 1.0 / HID ** 0.5),
        "bias_hh": jax.random.uniform(k[3], (4 * HID,), jnp.float32,
                                      -1.0 / HID ** 0.5, 1.0 / HID ** 0.5),
        "linear_w": xavier_normal(k[4], (1, HID)),                 # nn.init.xavier_normal_
        "linear_b": jax.random.uniform(k[5], (1,), jnp.float32,
                                       -1.0 / HID ** 0.5, 1.0 / HID ** 0.5),
    }

    x = jax.random.normal(k[6], (SEQ, BATCH, IN), jnp.float32)
    h0 = jax.random.normal(k[7], (1, BATCH, HID), jnp.float32) * 0.1
    c0 = jnp.zeros((1, BATCH, HID), jnp.float32)

    # One-time folding at parameter-load time; per-call path is a single jitted fn.
    folded = jax.tree_util.tree_map(jax.block_until_ready, fold_params(params, mean, std))

    out = discriminator_forward(x, h0, c0, folded)
    jax.block_until_ready(out)

    ref = discriminator_ref(x, h0, c0, params, mean, std)
    assert out.shape == (1, BATCH, 1), out.shape
    # bf16 MXU operands (f32 accumulate / elementwise) -> relaxed tolerance vs f32 ref.
    assert jnp.allclose(out, ref, atol=2e-2, rtol=1e-2), (out, ref)

    print("KERNEL_OK")
</pallas_src>

<mosaic_0001>
module attributes {stable_mosaic.version = 11 : i64} {
  func.func @_disc_kernel(%arg0: memref<64x8xbf16, #tpu.memory_space<vmem>>, %arg1: memref<8x32xf32, #tpu.memory_space<vmem>>, %arg2: memref<8x32xf32, #tpu.memory_space<vmem>>, %arg3: memref<8x128xbf16, #tpu.memory_space<vmem>>, %arg4: memref<32x128xbf16, #tpu.memory_space<vmem>>, %arg5: memref<1x128xf32, #tpu.memory_space<vmem>>, %arg6: memref<2x32xf32, #tpu.memory_space<vmem>>, %arg7: memref<8x1xf32, #tpu.memory_space<vmem>>) attributes {dimension_semantics = [], scalar_prefetch = 0 : i64, scratch_operands = 0 : i64, tpu.core_type = #tpu.core_type<tc>} {
    %c0 = arith.constant 0 : index
    %c0_0 = arith.constant 0 : index
    %0 = vector.load %arg0[%c0, %c0_0] : memref<64x8xbf16, #tpu.memory_space<vmem>>, vector<64x8xbf16>
    %c0_1 = arith.constant 0 : index
    %c0_2 = arith.constant 0 : index
    %1 = vector.load %arg3[%c0_1, %c0_2] : memref<8x128xbf16, #tpu.memory_space<vmem>>, vector<8x128xbf16>
    %cst = arith.constant dense<0.000000e+00> : vector<64x128xf32>
    %2 = tpu.matmul %0, %1, %cst {dimension_numbers = #tpu.dot_dimension_numbers<[1], [0], [0], [1], [0, 0, 1, 1], [], []>} : vector<64x8xbf16>, vector<8x128xbf16>, vector<64x128xf32> -> vector<64x128xf32>
    %c0_3 = arith.constant 0 : index
    %c0_4 = arith.constant 0 : index
    %3 = vector.load %arg5[%c0_3, %c0_4] : memref<1x128xf32, #tpu.memory_space<vmem>>, vector<1x128xf32>
    %4 = vector.broadcast %3 : vector<1x128xf32> to vector<64x128xf32>
    %5 = arith.addf %2, %4 : vector<64x128xf32>
    %c0_5 = arith.constant 0 : index
    %c0_6 = arith.constant 0 : index
    %6 = vector.load %arg4[%c0_5, %c0_6] : memref<32x128xbf16, #tpu.memory_space<vmem>>, vector<32x128xbf16>
    %c0_7 = arith.constant 0 : index
    %c0_8 = arith.constant 0 : index
    %7 = vector.load %arg1[%c0_7, %c0_8] : memref<8x32xf32, #tpu.memory_space<vmem>>, vector<8x32xf32>
    %c0_9 = arith.constant 0 : index
    %c0_10 = arith.constant 0 : index
    %8 = vector.load %arg2[%c0_9, %c0_10] : memref<8x32xf32, #tpu.memory_space<vmem>>, vector<8x32xf32>
    %9 = vector.extract_strided_slice %5 {offsets = [0, 0], sizes = [8, 128], strides = [1, 1]} : vector<64x128xf32> to vector<8x128xf32>
    %10 = arith.truncf %7 : vector<8x32xf32> to vector<8x32xbf16>
    %cst_11 = arith.constant dense<0.000000e+00> : vector<8x128xf32>
    %11 = tpu.matmul %10, %6, %cst_11 {dimension_numbers = #tpu.dot_dimension_numbers<[1], [0], [0], [1], [0, 0, 1, 1], [], []>} : vector<8x32xbf16>, vector<32x128xbf16>, vector<8x128xf32> -> vector<8x128xf32>
    %12 = arith.addf %9, %11 : vector<8x128xf32>
    %13 = arith.negf %12 : vector<8x128xf32>
    %14 = math.exp %13 : vector<8x128xf32>
    %cst_12 = arith.constant 1.000000e+00 : f32
    %15 = vector.broadcast %cst_12 : f32 to vector<8x128xf32>
    %16 = arith.addf %15, %14 : vector<8x128xf32>
    %17 = arith.divf %15, %16 : vector<8x128xf32>
    %18 = math.tanh %12 : vector<8x128xf32>
    %19 = vector.extract_strided_slice %17 {offsets = [0, 0], sizes = [8, 32], strides = [1, 1]} : vector<8x128xf32> to vector<8x32xf32>
    %20 = vector.extract_strided_slice %17 {offsets = [0, 32], sizes = [8, 32], strides = [1, 1]} : vector<8x128xf32> to vector<8x32xf32>
    %21 = vector.extract_strided_slice %18 {offsets = [0, 64], sizes = [8, 32], strides = [1, 1]} : vector<8x128xf32> to vector<8x32xf32>
    %22 = vector.extract_strided_slice %17 {offsets = [0, 96], sizes = [8, 32], strides = [1, 1]} : vector<8x128xf32> to vector<8x32xf32>
    %23 = arith.mulf %20, %8 : vector<8x32xf32>
    %24 = arith.mulf %19, %21 : vector<8x32xf32>
    %25 = arith.addf %23, %24 : vector<8x32xf32>
    %26 = math.tanh %25 : vector<8x32xf32>
    %27 = arith.mulf %22, %26 : vector<8x32xf32>
    %28 = vector.extract_strided_slice %5 {offsets = [8, 0], sizes = [8, 128], strides = [1, 1]} : vector<64x128xf32> to vector<8x128xf32>
    %29 = arith.truncf %27 : vector<8x32xf32> to vector<8x32xbf16>
    %cst_13 = arith.constant dense<0.000000e+00> : vector<8x128xf32>
    %30 = tpu.matmul %29, %6, %cst_13 {dimension_numbers = #tpu.dot_dimension_numbers<[1], [0], [0], [1], [0, 0, 1, 1], [], []>} : vector<8x32xbf16>, vector<32x128xbf16>, vector<8x128xf32> -> vector<8x128xf32>
    %31 = arith.addf %28, %30 : vector<8x128xf32>
    %32 = arith.negf %31 : vector<8x128xf32>
    %33 = math.exp %32 : vector<8x128xf32>
    %cst_14 = arith.constant 1.000000e+00 : f32
    %34 = vector.broadcast %cst_14 : f32 to vector<8x128xf32>
    %35 = arith.addf %34, %33 : vector<8x128xf32>
    %36 = arith.divf %34, %35 : vector<8x128xf32>
    %37 = math.tanh %31 : vector<8x128xf32>
    %38 = vector.extract_strided_slice %36 {offsets = [0, 0], sizes = [8, 32], strides = [1, 1]} : vector<8x128xf32> to vector<8x32xf32>
    %39 = vector.extract_strided_slice %36 {offsets = [0, 32], sizes = [8, 32], strides = [1, 1]} : vector<8x128xf32> to vector<8x32xf32>
    %40 = vector.extract_strided_slice %37 {offsets = [0, 64], sizes = [8, 32], strides = [1, 1]} : vector<8x128xf32> to vector<8x32xf32>
    %41 = vector.extract_strided_slice %36 {offsets = [0, 96], sizes = [8, 32], strides = [1, 1]} : vector<8x128xf32> to vector<8x32xf32>
    %42 = arith.mulf %39, %25 : vector<8x32xf32>
    %43 = arith.mulf %38, %40 : vector<8x32xf32>
    %44 = arith.addf %42, %43 : vector<8x32xf32>
    %45 = math.tanh %44 : vector<8x32xf32>
    %46 = arith.mulf %41, %45 : vector<8x32xf32>
    %47 = vector.extract_strided_slice %5 {offsets = [16, 0], sizes = [8, 128], strides = [1, 1]} : vector<64x128xf32> to vector<8x128xf32>
    %48 = arith.truncf %46 : vector<8x32xf32> to vector<8x32xbf16>
    %cst_15 = arith.constant dense<0.000000e+00> : vector<8x128xf32>
    %49 = tpu.matmul %48, %6, %cst_15 {dimension_numbers = #tpu.dot_dimension_numbers<[1], [0], [0], [1], [0, 0, 1, 1], [], []>} : vector<8x32xbf16>, vector<32x128xbf16>, vector<8x128xf32> -> vector<8x128xf32>
    %50 = arith.addf %47, %49 : vector<8x128xf32>
    %51 = arith.negf %50 : vector<8x128xf32>
    %52 = math.exp %51 : vector<8x128xf32>
    %cst_16 = arith.constant 1.000000e+00 : f32
    %53 = vector.broadcast %cst_16 : f32 to vector<8x128xf32>
    %54 = arith.addf %53, %52 : vector<8x128xf32>
    %55 = arith.divf %53, %54 : vector<8x128xf32>
    %56 = math.tanh %50 : vector<8x128xf32>
    %57 = vector.extract_strided_slice %55 {offsets = [0, 0], sizes = [8, 32], strides = [1, 1]} : vector<8x128xf32> to vector<8x32xf32>
    %58 = vector.extract_strided_slice %55 {offsets = [0, 32], sizes = [8, 32], strides = [1, 1]} : vector<8x128xf32> to vector<8x32xf32>
    %59 = vector.extract_strided_slice %56 {offsets = [0, 64], sizes = [8, 32], strides = [1, 1]} : vector<8x128xf32> to vector<8x32xf32>
    %60 = vector.extract_strided_slice %55 {offsets = [0, 96], sizes = [8, 32], strides = [1, 1]} : vector<8x128xf32> to vector<8x32xf32>
    %61 = arith.mulf %58, %44 : vector<8x32xf32>
    %62 = arith.mulf %57, %59 : vector<8x32xf32>
    %63 = arith.addf %61, %62 : vector<8x32xf32>
    %64 = math.tanh %63 : vector<8x32xf32>
    %65 = arith.mulf %60, %64 : vector<8x32xf32>
    %66 = vector.extract_strided_slice %5 {offsets = [24, 0], sizes = [8, 128], strides = [1, 1]} : vector<64x128xf32> to vector<8x128xf32>
    %67 = arith.truncf %65 : vector<8x32xf32> to vector<8x32xbf16>
    %cst_17 = arith.constant dense<0.000000e+00> : vector<8x128xf32>
    %68 = tpu.matmul %67, %6, %cst_17 {dimension_numbers = #tpu.dot_dimension_numbers<[1], [0], [0], [1], [0, 0, 1, 1], [], []>} : vector<8x32xbf16>, vector<32x128xbf16>, vector<8x128xf32> -> vector<8x128xf32>
    %69 = arith.addf %66, %68 : vector<8x128xf32>
    %70 = arith.negf %69 : vector<8x128xf32>
    %71 = math.exp %70 : vector<8x128xf32>
    %cst_18 = arith.constant 1.000000e+00 : f32
    %72 = vector.broadcast %cst_18 : f32 to vector<8x128xf32>
    %73 = arith.addf %72, %71 : vector<8x128xf32>
    %74 = arith.divf %72, %73 : vector<8x128xf32>
    %75 = math.tanh %69 : vector<8x128xf32>
    %76 = vector.extract_strided_slice %74 {offsets = [0, 0], sizes = [8, 32], strides = [1, 1]} : vector<8x128xf32> to vector<8x32xf32>
    %77 = vector.extract_strided_slice %74 {offsets = [0, 32], sizes = [8, 32], strides = [1, 1]} : vector<8x128xf32> to vector<8x32xf32>
    %78 = vector.extract_strided_slice %75 {offsets = [0, 64], sizes = [8, 32], strides = [1, 1]} : vector<8x128xf32> to vector<8x32xf32>
    %79 = vector.extract_strided_slice %74 {offsets = [0, 96], sizes = [8, 32], strides = [1, 1]} : vector<8x128xf32> to vector<8x32xf32>
    %80 = arith.mulf %77, %63 : vector<8x32xf32>
    %81 = arith.mulf %76, %78 : vector<8x32xf32>
    %82 = arith.addf %80, %81 : vector<8x32xf32>
    %83 = math.tanh %82 : vector<8x32xf32>
    %84 = arith.mulf %79, %83 : vector<8x32xf32>
    %85 = vector.extract_strided_slice %5 {offsets = [32, 0], sizes = [8, 128], strides = [1, 1]} : vector<64x128xf32> to vector<8x128xf32>
    %86 = arith.truncf %84 : vector<8x32xf32> to vector<8x32xbf16>
    %cst_19 = arith.constant dense<0.000000e+00> : vector<8x128xf32>
    %87 = tpu.matmul %86, %6, %cst_19 {dimension_numbers = #tpu.dot_dimension_numbers<[1], [0], [0], [1], [0, 0, 1, 1], [], []>} : vector<8x32xbf16>, vector<32x128xbf16>, vector<8x128xf32> -> vector<8x128xf32>
    %88 = arith.addf %85, %87 : vector<8x128xf32>
    %89 = arith.negf %88 : vector<8x128xf32>
    %90 = math.exp %89 : vector<8x128xf32>
    %cst_20 = arith.constant 1.000000e+00 : f32
    %91 = vector.broadcast %cst_20 : f32 to vector<8x128xf32>
    %92 = arith.addf %91, %90 : vector<8x128xf32>
    %93 = arith.divf %91, %92 : vector<8x128xf32>
    %94 = math.tanh %88 : vector<8x128xf32>
    %95 = vector.extract_strided_slice %93 {offsets = [0, 0], sizes = [8, 32], strides = [1, 1]} : vector<8x128xf32> to vector<8x32xf32>
    %96 = vector.extract_strided_slice %93 {offsets = [0, 32], sizes = [8, 32], strides = [1, 1]} : vector<8x128xf32> to vector<8x32xf32>
    %97 = vector.extract_strided_slice %94 {offsets = [0, 64], sizes = [8, 32], strides = [1, 1]} : vector<8x128xf32> to vector<8x32xf32>
    %98 = vector.extract_strided_slice %93 {offsets = [0, 96], sizes = [8, 32], strides = [1, 1]} : vector<8x128xf32> to vector<8x32xf32>
    %99 = arith.mulf %96, %82 : vector<8x32xf32>
    %100 = arith.mulf %95, %97 : vector<8x32xf32>
    %101 = arith.addf %99, %100 : vector<8x32xf32>
    %102 = math.tanh %101 : vector<8x32xf32>
    %103 = arith.mulf %98, %102 : vector<8x32xf32>
    %104 = vector.extract_strided_slice %5 {offsets = [40, 0], sizes = [8, 128], strides = [1, 1]} : vector<64x128xf32> to vector<8x128xf32>
    %105 = arith.truncf %103 : vector<8x32xf32> to vector<8x32xbf16>
    %cst_21 = arith.constant dense<0.000000e+00> : vector<8x128xf32>
    %106 = tpu.matmul %105, %6, %cst_21 {dimension_numbers = #tpu.dot_dimension_numbers<[1], [0], [0], [1], [0, 0, 1, 1], [], []>} : vector<8x32xbf16>, vector<32x128xbf16>, vector<8x128xf32> -> vector<8x128xf32>
    %107 = arith.addf %104, %106 : vector<8x128xf32>
    %108 = arith.negf %107 : vector<8x128xf32>
    %109 = math.exp %108 : vector<8x128xf32>
    %cst_22 = arith.constant 1.000000e+00 : f32
    %110 = vector.broadcast %cst_22 : f32 to vector<8x128xf32>
    %111 = arith.addf %110, %109 : vector<8x128xf32>
    %112 = arith.divf %110, %111 : vector<8x128xf32>
    %113 = math.tanh %107 : vector<8x128xf32>
    %114 = vector.extract_strided_slice %112 {offsets = [0, 0], sizes = [8, 32], strides = [1, 1]} : vector<8x128xf32> to vector<8x32xf32>
    %115 = vector.extract_strided_slice %112 {offsets = [0, 32], sizes = [8, 32], strides = [1, 1]} : vector<8x128xf32> to vector<8x32xf32>
    %116 = vector.extract_strided_slice %113 {offsets = [0, 64], sizes = [8, 32], strides = [1, 1]} : vector<8x128xf32> to vector<8x32xf32>
    %117 = vector.extract_strided_slice %112 {offsets = [0, 96], sizes = [8, 32], strides = [1, 1]} : vector<8x128xf32> to vector<8x32xf32>
    %118 = arith.mulf %115, %101 : vector<8x32xf32>
    %119 = arith.mulf %114, %116 : vector<8x32xf32>
    %120 = arith.addf %118, %119 : vector<8x32xf32>
    %121 = math.tanh %120 : vector<8x32xf32>
    %122 = arith.mulf %117, %121 : vector<8x32xf32>
    %123 = vector.extract_strided_slice %5 {offsets = [48, 0], sizes = [8, 128], strides = [1, 1]} : vector<64x128xf32> to vector<8x128xf32>
    %124 = arith.truncf %122 : vector<8x32xf32> to vector<8x32xbf16>
    %cst_23 = arith.constant dense<0.000000e+00> : vector<8x128xf32>
    %125 = tpu.matmul %124, %6, %cst_23 {dimension_numbers = #tpu.dot_dimension_numbers<[1], [0], [0], [1], [0, 0, 1, 1], [], []>} : vector<8x32xbf16>, vector<32x128xbf16>, vector<8x128xf32> -> vector<8x128xf32>
    %126 = arith.addf %123, %125 : vector<8x128xf32>
    %127 = arith.negf %126 : vector<8x128xf32>
    %128 = math.exp %127 : vector<8x128xf32>
    %cst_24 = arith.constant 1.000000e+00 : f32
    %129 = vector.broadcast %cst_24 : f32 to vector<8x128xf32>
    %130 = arith.addf %129, %128 : vector<8x128xf32>
    %131 = arith.divf %129, %130 : vector<8x128xf32>
    %132 = math.tanh %126 : vector<8x128xf32>
    %133 = vector.extract_strided_slice %131 {offsets = [0, 0], sizes = [8, 32], strides = [1, 1]} : vector<8x128xf32> to vector<8x32xf32>
    %134 = vector.extract_strided_slice %131 {offsets = [0, 32], sizes = [8, 32], strides = [1, 1]} : vector<8x128xf32> to vector<8x32xf32>
    %135 = vector.extract_strided_slice %132 {offsets = [0, 64], sizes = [8, 32], strides = [1, 1]} : vector<8x128xf32> to vector<8x32xf32>
    %136 = vector.extract_strided_slice %131 {offsets = [0, 96], sizes = [8, 32], strides = [1, 1]} : vector<8x128xf32> to vector<8x32xf32>
    %137 = arith.mulf %134, %120 : vector<8x32xf32>
    %138 = arith.mulf %133, %135 : vector<8x32xf32>
    %139 = arith.addf %137, %138 : vector<8x32xf32>
    %140 = math.tanh %139 : vector<8x32xf32>
    %141 = arith.mulf %136, %140 : vector<8x32xf32>
    %142 = vector.extract_strided_slice %5 {offsets = [56, 0], sizes = [8, 128], strides = [1, 1]} : vector<64x128xf32> to vector<8x128xf32>
    %143 = arith.truncf %141 : vector<8x32xf32> to vector<8x32xbf16>
    %cst_25 = arith.constant dense<0.000000e+00> : vector<8x128xf32>
    %144 = tpu.matmul %143, %6, %cst_25 {dimension_numbers = #tpu.dot_dimension_numbers<[1], [0], [0], [1], [0, 0, 1, 1], [], []>} : vector<8x32xbf16>, vector<32x128xbf16>, vector<8x128xf32> -> vector<8x128xf32>
    %145 = arith.addf %142, %144 : vector<8x128xf32>
    %146 = arith.negf %145 : vector<8x128xf32>
    %147 = math.exp %146 : vector<8x128xf32>
    %cst_26 = arith.constant 1.000000e+00 : f32
    %148 = vector.broadcast %cst_26 : f32 to vector<8x128xf32>
    %149 = arith.addf %148, %147 : vector<8x128xf32>
    %150 = arith.divf %148, %149 : vector<8x128xf32>
    %151 = math.tanh %145 : vector<8x128xf32>
    %152 = vector.extract_strided_slice %150 {offsets = [0, 0], sizes = [8, 32], strides = [1, 1]} : vector<8x128xf32> to vector<8x32xf32>
    %153 = vector.extract_strided_slice %150 {offsets = [0, 32], sizes = [8, 32], strides = [1, 1]} : vector<8x128xf32> to vector<8x32xf32>
    %154 = vector.extract_strided_slice %151 {offsets = [0, 64], sizes = [8, 32], strides = [1, 1]} : vector<8x128xf32> to vector<8x32xf32>
    %155 = vector.extract_strided_slice %150 {offsets = [0, 96], sizes = [8, 32], strides = [1, 1]} : vector<8x128xf32> to vector<8x32xf32>
    %156 = arith.mulf %153, %139 : vector<8x32xf32>
    %157 = arith.mulf %152, %154 : vector<8x32xf32>
    %158 = arith.addf %156, %157 : vector<8x32xf32>
    %159 = math.tanh %158 : vector<8x32xf32>
    %160 = arith.mulf %155, %159 : vector<8x32xf32>
    %c0_27 = arith.constant 0 : index
    %c0_28 = arith.constant 0 : index
    %161 = vector.load %arg6[%c0_27, %c0_28] : memref<2x32xf32, #tpu.memory_space<vmem>>, vector<1x32xf32>
    %162 = vector.broadcast %161 : vector<1x32xf32> to vector<8x32xf32>
    %163 = arith.mulf %160, %162 : vector<8x32xf32>
    %c1 = arith.constant 1 : index
    %c0_29 = arith.constant 0 : index
    %164 = vector.load %arg6[%c1, %c0_29] : memref<2x32xf32, #tpu.memory_space<vmem>>, vector<1x32xf32>
    %165 = vector.broadcast %164 : vector<1x32xf32> to vector<8x32xf32>
    %166 = arith.addf %163, %165 : vector<8x32xf32>
    %cst_30 = arith.constant dense<0.000000e+00> : vector<8xf32>
    %167 = vector.multi_reduction <add>, %166, %cst_30 [1] : vector<8x32xf32> to vector<8xf32>
    %168 = vector.shape_cast %167 : vector<8xf32> to vector<8x1xf32>
    %169 = arith.negf %168 : vector<8x1xf32>
    %170 = math.exp %169 : vector<8x1xf32>
    %cst_31 = arith.constant 1.000000e+00 : f32
    %171 = vector.broadcast %cst_31 : f32 to vector<8x1xf32>
    %172 = arith.addf %171, %170 : vector<8x1xf32>
    %173 = arith.divf %171, %172 : vector<8x1xf32>
    %c0_32 = arith.constant 0 : index
    %c0_33 = arith.constant 0 : index
    %174 = vector.load %arg7[%c0_32, %c0_33] : memref<8x1xf32, #tpu.memory_space<vmem>>, vector<8x1xf32>
    tpu.vector_store %arg7[%c0_32, %c0_33], %173 {strides = array<i32>} : memref<8x1xf32, #tpu.memory_space<vmem>>, vector<8x1xf32>,
    return
  }
}

</mosaic_0001>

<bundles_post_ra>
// kernel: discriminator_forward.1
= control target key start
LH: loop header
LB: loop body
LE: loop exit
PB: predicated region body
PF: predicated region fallthrough
CT: control target
= control target key end

     0   :  { %vm76_vm0 = vcmask 1043456   ;;  %vm63_vm1 = vcmask 64512   ;;  %v993_v1 = vmov 0.0   ;;  %vm994_vm2 = vmmov 0   ;;  %s995_s12 = smov 64   ;;  %s996_s14 = smov 32   ;;  %s1203_s3 = inlined_call_operand.vmem [shape: bf16[8,128], index: 3, kind: input, shape index: {}]   ;;  %s1204_s4 = inlined_call_operand.vmem [shape: bf16[32,128], index: 4, kind: input, shape index: {}]   ;;  %s1205_s0 = inlined_call_operand.vmem [shape: bf16[64,8], index: 0, kind: input, shape index: {}]   ;;  %s1206_s1 = inlined_call_operand.vmem [shape: f32[8,32], index: 1, kind: input, shape index: {}]   ;;  %s1207_s5 = inlined_call_operand.vmem [shape: f32[1,128], index: 5, kind: input, shape index: {}]   ;;  %s1208_s2 = inlined_call_operand.vmem [shape: f32[8,32], index: 2, kind: input, shape index: {}]   ;;  %s1209_s6 = inlined_call_operand.vmem [shape: f32[2,32], index: 6, kind: input, shape index: {}]   ;;  %s1210_s7 = inlined_call_operand.vmem [shape: f32[8,1], index: 7, kind: output, shape index: {}]  }
   0x1   :  { %v35_v0 = vld [vmem:[%s1203_s3] sm:$0xf]  ;;  %849 = vmatprep.subr.bf16.mxu1 %v993_v1  ;;  %853 = vmatprep.mubr.msk.bf16.mxu1 %vm994_vm2, %v993_v1  ;;  %v921_v5 = vld [vmem:[%s1205_s0 + $0x8] sm:$0xff]   ;;  %vm164_vm3 = vcmask 261120   ;;  %v923_v53 = vld [vmem:[%s1205_s0 + $0x10] sm:$0xff]   ;;  %s997_s19 = smov 96  }
   0x2   :  { %913 = vmatprep.subr.msk.bf16.mxu0 %vm76_vm0, %v35_v0  ;;  %v78_v2 = vsel %vm76_vm0, %v35_v0, 0  ;;  %v1047_v3 = vld [vmem:[%s1204_s4] sm:$0xff]   ;;  %v1062_v6 = vld [vmem:[%s1204_s4 + $0x8] sm:$0xff]   ;;  %v924_v54 = vld [vmem:[%s1205_s0 + $0x18] sm:$0xff]   ;;  %vm774_vm4 = vcmask 7168  }
   0x3   :  { %840 = vmatpush3.bf16.msra.mxu0 %v78_v2  ;;  %v920_v4 = vld [vmem:[%s1205_s0] sm:$0xff]   ;;  %850 = vmatpush3.bf16.msra.mxu1 %v1047_v3 }
   0x4   :  { %865 = vmatprep.subr.bf16.mxu0 %v993_v1  ;;  %841 = vmatprep.mubr.msk.bf16.mxu0 %vm63_vm1, %v920_v4  ;;  %v149_v7 = vld [vmem:[%s1206_s1] sm:$0xff] }
   0x5   :  { %851 = vmatprep.subr.bf16.mxu1 %v993_v1  ;;  %v151_v8 = vpack.c.bf16 %v149_v7, %v149_v7  ;;  %v1084_v9 = vld [vmem:[%s1207_s5] ss:$0 sm:$0xff] }
   0x6   :  { %842 = vmatmul.mubr.msk.bf16.vlgmr.msra.gmra.mrb[0].mxu0 %vm63_vm1, %v921_v5  ;;  %v150_v21 = vld [vmem:[%s1208_s2] sm:$0xff] }
   0x7   :  { %866 = vmatpush3.bf16.msra.mxu0 %v1047_v3  ;;  %852 = vmatpush3.bf16.msra.mxu1 %v1062_v6 }
   0x8   :  { %867 = vmatprep.subr.bf16.mxu0 %v993_v1  ;;  %857 = vmatprep.subr.bf16.mxu1 %v993_v1 }
   0x9   :  { %845 = vmatprep.mubr.msk.bf16.mxu0 %vm63_vm1, %v923_v53 }
   0xa   :  { %854 = vmatmul.mubr.msk.bf16.vlgmr.msra.gmra.mrb[0].mxu1 %vm164_vm3, %v151_v8 }
   0xb   :  { %868 = vmatpush3.bf16.msra.mxu0 %v1062_v6  ;;  %858 = vmatpush3.bf16.msra.mxu1 %v1047_v3 }
   0xc   :  { %861 = vmatprep.mubr.msk.bf16.mxu1 %vm994_vm2, %v993_v1  ;;  %859 = vmatprep.subr.bf16.mxu1 %v993_v1 }
   0xd   :  { %881 = vmatprep.subr.bf16.mxu0 %v993_v1 }
   0xe   :  { %846 = vmatmul.mubr.msk.bf16.gmra.mrb[4].mxu0 %vm63_vm1, %v924_v54 }
   0xf   :  { %860 = vmatpush3.bf16.msra.mxu1 %v1062_v6  ;;  %869 = vmatprep.mubr.msk.bf16.mxu0 %vm994_vm2, %v993_v1 }
  0x10   :  { %873 = vmatprep.subr.bf16.mxu1 %v993_v1 }
  0xd9   :  { %v1086_v10 = vpop.f32.mrb[0].mxu0 }
  0xda   :  { %v114_v11 = vpop.f32.mrb[1].mxu0  ;;  %v123_v0 = vadd.f32 %v1086_v10, %v1084_v9 }
  0xdb   :  { %v115_v12 = vadd.f32 %v1084_v9, %v114_v11  ;;  %v1089_v13 = vpop.f32.mrb[2].mxu0 }
  0xdc   :  { %v117_v14 = vpop.f32.mrb[3].mxu0 }
  0xdd   :  { %v202_v15 = vpop.f32.mrb[0].mxu1  ;;  %v118_v37 = vadd.f32 %v1084_v9, %v117_v14 }
  0xde   :  { %v208_v16 = vadd.f32 %v202_v15, %v115_v12  ;;  %v855_v17 = vpop.f32.mrb[1].mxu1 }
  0xdf   :  { %v205_v18 = vpop.f32.mrb[2].mxu1 }
  0xe0   :  { %925 = vtanh.f32 %v208_v16  ;;  %v856_v19 = vpop.f32.mrb[3].mxu1  ;;  %v792_v22 = vmul.f32 -1.442695, %v208_v16 }
  0xe1   :  { %v1121_v59 = vpop.f32.mrb[4].mxu0 }
  0xe2   :  { %927 = vpow2.f32 %v792_v22  ;;  %v1123_v60 = vpop.f32.mrb[5].mxu0 }
  0xe3   :  { %v1125_v61 = vpop.f32.mrb[6].mxu0 }
  0xe4   :  { %v1127_v62 = vpop.f32.mrb[7].mxu0 }
  0xea   :  { %v926_v20 = vpop.eup %925 }
  0xeb   :  { %222 = vrot.lane.b32.xlu0 %v926_v20, %s995_s12 }
  0xec   :  { %v928_v23 = vpop.eup %927 }
  0xed   :  { %v212_v24 = vadd.f32 1.0, %v928_v23 }
  0xef   :  { %217 = vrot.lane.b32.xlu0 %v150_v21, %s996_s14  ;;  %929 = vrcp.f32 %v212_v24 }
  0xf9   :  { %v930_v25 = vpop.eup %929 }
 0x15d   :  { %v223_v26 = vpop.permute.xlu0 %222 }
 0x15e   :  { %v225_v27 = vmul.f32 %v930_v25, %v223_v26  ;;  %v126_v26 = vadd.f32 %v1089_v13, %v1084_v9 }
 0x160   :  { %227 = vrot.lane.b32.xlu1 %v225_v27, %s996_s14 }
 0x161   :  { %v218_v28 = vpop.permute.xlu0 %217 }
 0x162   :  { %v220_v29 = vmul.f32 %v930_v25, %v218_v28 }
 0x1d2   :  { %v228_v30 = vpop.permute.xlu1 %227 }
 0x1d3   :  { %v230_v31 = vadd.f32 %v228_v30, %v220_v29 }
 0x1d5   :  { %931 = vtanh.f32 %v230_v31 }
 0x1df   :  { %v932_v32 = vpop.eup %931 }
 0x1e0   :  { %233 = vrot.lane.b32.xlu1 %v932_v32, %s995_s12 }
 0x252   :  { %v234_v33 = vpop.permute.xlu1 %233 }
 0x253   :  { %v236_v34 = vmul.f32 %v930_v25, %v234_v33 }
 0x255   :  { %v237_v35 = vpack.c.bf16 %v236_v34, %v236_v34 }
 0x257   :  { %239 = vrot.lane.b32.xlu0 %v237_v35, %s996_s14 }
 0x2c9   :  { %v240_v36 = vpop.permute.xlu0 %239 }
 0x2ca   :  { %862 = vmatmul.mubr.msk.bf16.vlgmr.msra.gmra.mrb[4].mxu1 %vm164_vm3, %v240_v36 }
 0x2cb   :  { %874 = vmatpush3.bf16.msra.mxu1 %v1047_v3  ;;  %877 = vmatprep.mubr.msk.bf16.mxu1 %vm994_vm2, %v993_v1 }
 0x2cc   :  { %875 = vmatprep.subr.bf16.mxu1 %v993_v1 }
 0x2cf   :  { %876 = vmatpush3.bf16.msra.mxu1 %v1062_v6 }
 0x2d0   :  { %889 = vmatprep.subr.bf16.mxu1 %v993_v1 }
 0x39d   :  { %v278_v38 = vpop.f32.mrb[4].mxu1 }
 0x39e   :  { %v284_v39 = vadd.f32 %v278_v38, %v118_v37  ;;  %v863_v40 = vpop.f32.mrb[5].mxu1 }
 0x39f   :  { %v281_v41 = vpop.f32.mrb[6].mxu1 }
 0x3a0   :  { %933 = vtanh.f32 %v284_v39  ;;  %v864_v42 = vpop.f32.mrb[7].mxu1  ;;  %v794_v44 = vmul.f32 -1.442695, %v284_v39 }
 0x3a2   :  { %935 = vpow2.f32 %v794_v44 }
 0x3aa   :  { %v934_v43 = vpop.eup %933 }
 0x3ab   :  { %294 = vrot.lane.b32.xlu1 %v934_v43, %s995_s12 }
 0x3ac   :  { %v936_v45 = vpop.eup %935 }
 0x3ad   :  { %v288_v46 = vadd.f32 1.0, %v936_v45 }
 0x3af   :  { %937 = vrcp.f32 %v288_v46  ;;  %v131_v46 = vadd.f32 %v1084_v9, %v1123_v60 }
 0x3b9   :  { %v938_v47 = vpop.eup %937 }
 0x3ba   :  { %v292_v50 = vmul.f32 %v938_v47, %v230_v31 }
 0x41d   :  { %v295_v48 = vpop.permute.xlu1 %294 }
 0x41e   :  { %v297_v49 = vmul.f32 %v938_v47, %v295_v48 }
 0x420   :  { %299 = vrot.lane.b32.xlu0 %v297_v49, %s996_s14 }
 0x492   :  { %v300_v51 = vpop.permute.xlu0 %299 }
 0x493   :  { %v302_v52 = vadd.f32 %v300_v51, %v292_v50 }
 0x495   :  { %939 = vtanh.f32 %v302_v52 }
 0x49f   :  { %v940_v55 = vpop.eup %939 }
 0x4a0   :  { %305 = vrot.lane.b32.xlu1 %v940_v55, %s995_s12 }
 0x512   :  { %v306_v56 = vpop.permute.xlu1 %305 }
 0x513   :  { %v308_v57 = vmul.f32 %v938_v47, %v306_v56 }
 0x515   :  { %v309_v58 = vpack.c.bf16 %v308_v57, %v308_v57 }
 0x517   :  { %311 = vrot.lane.b32.xlu0 %v309_v58, %s996_s14 }
 0x589   :  { %v312_v63 = vpop.permute.xlu0 %311 }
 0x58a   :  { %870 = vmatmul.mubr.msk.bf16.vlgmr.msra.gmra.mrb[8].mxu0 %vm164_vm3, %v312_v63 }
 0x58b   :  { %882 = vmatpush3.bf16.msra.mxu0 %v1047_v3  ;;  %885 = vmatprep.mubr.msk.bf16.mxu0 %vm994_vm2, %v993_v1 }
 0x58c   :  { %883 = vmatprep.subr.bf16.mxu0 %v993_v1 }
 0x58f   :  { %884 = vmatpush3.bf16.msra.mxu0 %v1062_v6 }
 0x590   :  { %897 = vmatprep.subr.bf16.mxu0 %v993_v1 }
 0x65d   :  { %v350_v2 = vpop.f32.mrb[8].mxu0 }
 0x65e   :  { %v356_v4 = vadd.f32 %v350_v2, %v123_v0  ;;  %v871_v5 = vpop.f32.mrb[9].mxu0 }
 0x65f   :  { %v353_v7 = vpop.f32.mrb[10].mxu0 }
 0x660   :  { %941 = vtanh.f32 %v356_v4  ;;  %v872_v8 = vpop.f32.mrb[11].mxu0  ;;  %v796_v12 = vmul.f32 -1.442695, %v356_v4 }
 0x662   :  { %943 = vpow2.f32 %v796_v12 }
 0x66a   :  { %v942_v11 = vpop.eup %941 }
 0x66b   :  { %366 = vrot.lane.b32.xlu1 %v942_v11, %s995_s12  ;;  %v134_v11 = vadd.f32 %v1084_v9, %v1127_v62 }
 0x66c   :  { %v944_v14 = vpop.eup %943 }
 0x66d   :  { %v360_v15 = vadd.f32 1.0, %v944_v14 }
 0x66f   :  { %945 = vrcp.f32 %v360_v15 }
 0x679   :  { %v946_v16 = vpop.eup %945 }
 0x67a   :  { %v364_v10 = vmul.f32 %v946_v16, %v302_v52 }
 0x6dd   :  { %v367_v17 = vpop.permute.xlu1 %366 }
 0x6de   :  { %v369_v18 = vmul.f32 %v946_v16, %v367_v17 }
 0x6e0   :  { %371 = vrot.lane.b32.xlu0 %v369_v18, %s996_s14 }
 0x752   :  { %v372_v19 = vpop.permute.xlu0 %371 }
 0x753   :  { %v374_v20 = vadd.f32 %v372_v19, %v364_v10 }
 0x755   :  { %947 = vtanh.f32 %v374_v20 }
 0x75f   :  { %v948_v21 = vpop.eup %947 }
 0x760   :  { %377 = vrot.lane.b32.xlu1 %v948_v21, %s995_s12 }
 0x7d2   :  { %v378_v22 = vpop.permute.xlu1 %377 }
 0x7d3   :  { %v380_v23 = vmul.f32 %v946_v16, %v378_v22 }
 0x7d5   :  { %v381_v24 = vpack.c.bf16 %v380_v23, %v380_v23 }
 0x7d7   :  { %383 = vrot.lane.b32.xlu0 %v381_v24, %s996_s14 }
 0x849   :  { %v384_v25 = vpop.permute.xlu0 %383 }
 0x84a   :  { %878 = vmatmul.mubr.msk.bf16.vlgmr.msra.gmra.mrb[8].mxu1 %vm164_vm3, %v384_v25 }
 0x84b   :  { %890 = vmatpush3.bf16.msra.mxu1 %v1047_v3  ;;  %893 = vmatprep.mubr.msk.bf16.mxu1 %vm994_vm2, %v993_v1 }
 0x84c   :  { %891 = vmatprep.subr.bf16.mxu1 %v993_v1 }
 0x84f   :  { %892 = vmatpush3.bf16.msra.mxu1 %v1062_v6 }
 0x850   :  { %905 = vmatprep.subr.bf16.mxu1 %v993_v1 }
 0x91d   :  { %v422_v27 = vpop.f32.mrb[8].mxu1 }
 0x91e   :  { %v428_v28 = vadd.f32 %v422_v27, %v126_v26  ;;  %v879_v29 = vpop.f32.mrb[9].mxu1 }
 0x91f   :  { %v425_v30 = vpop.f32.mrb[10].mxu1 }
 0x920   :  { %949 = vtanh.f32 %v428_v28  ;;  %v880_v31 = vpop.f32.mrb[11].mxu1  ;;  %v798_v33 = vmul.f32 -1.442695, %v428_v28  ;;  %v139_v28 = vadd.f32 %v1121_v59, %v1084_v9 }
 0x922   :  { %951 = vpow2.f32 %v798_v33 }
 0x92a   :  { %v950_v32 = vpop.eup %949 }
 0x92b   :  { %438 = vrot.lane.b32.xlu1 %v950_v32, %s995_s12 }
 0x92c   :  { %v952_v34 = vpop.eup %951 }
 0x92d   :  { %v432_v35 = vadd.f32 1.0, %v952_v34 }
 0x92f   :  { %953 = vrcp.f32 %v432_v35 }
 0x939   :  { %v954_v36 = vpop.eup %953 }
 0x93a   :  { %v436_v13 = vmul.f32 %v954_v36, %v374_v20 }
 0x99d   :  { %v439_v37 = vpop.permute.xlu1 %438 }
 0x99e   :  { %v441_v38 = vmul.f32 %v954_v36, %v439_v37 }
 0x9a0   :  { %443 = vrot.lane.b32.xlu0 %v441_v38, %s996_s14 }
 0xa12   :  { %v444_v39 = vpop.permute.xlu0 %443 }
 0xa13   :  { %v446_v40 = vadd.f32 %v444_v39, %v436_v13 }
 0xa15   :  { %955 = vtanh.f32 %v446_v40 }
 0xa1f   :  { %v956_v41 = vpop.eup %955 }
 0xa20   :  { %449 = vrot.lane.b32.xlu1 %v956_v41, %s995_s12 }
 0xa92   :  { %v450_v42 = vpop.permute.xlu1 %449 }
 0xa93   :  { %v452_v43 = vmul.f32 %v954_v36, %v450_v42 }
 0xa95   :  { %v453_v44 = vpack.c.bf16 %v452_v43, %v452_v43 }
 0xa97   :  { %455 = vrot.lane.b32.xlu0 %v453_v44, %s996_s14 }
 0xb09   :  { %v456_v45 = vpop.permute.xlu0 %455 }
 0xb0a   :  { %886 = vmatmul.mubr.msk.bf16.vlgmr.msra.gmra.mrb[12].mxu0 %vm164_vm3, %v456_v45 }
 0xb0b   :  { %898 = vmatpush3.bf16.msra.mxu0 %v1047_v3  ;;  %901 = vmatprep.mubr.msk.bf16.mxu0 %vm994_vm2, %v993_v1 }
 0xb0c   :  { %899 = vmatprep.subr.bf16.mxu0 %v993_v1 }
 0xb0f   :  { %900 = vmatpush3.bf16.msra.mxu0 %v1062_v6 }
 0xbdd   :  { %v494_v47 = vpop.f32.mrb[12].mxu0 }
 0xbde   :  { %v500_v48 = vadd.f32 %v494_v47, %v131_v46  ;;  %v887_v49 = vpop.f32.mrb[13].mxu0  ;;  %v142_v47 = vadd.f32 %v1125_v61, %v1084_v9  ;;  %v807_v9 = vld [vmem:[%s1209_s6] ss:$0 sm:$0xff] }
 0xbdf   :  { %v497_v50 = vpop.f32.mrb[14].mxu0 }
 0xbe0   :  { %957 = vtanh.f32 %v500_v48  ;;  %v888_v51 = vpop.f32.mrb[15].mxu0  ;;  %v800_v53 = vmul.f32 -1.442695, %v500_v48 }
 0xbe2   :  { %959 = vpow2.f32 %v800_v53 }
 0xbea   :  { %v958_v52 = vpop.eup %957 }
 0xbeb   :  { %510 = vrot.lane.b32.xlu1 %v958_v52, %s995_s12 }
 0xbec   :  { %v960_v54 = vpop.eup %959 }
 0xbed   :  { %v504_v55 = vadd.f32 1.0, %v960_v54 }
 0xbef   :  { %961 = vrcp.f32 %v504_v55 }
 0xbf9   :  { %v962_v56 = vpop.eup %961 }
 0xbfa   :  { %v508_v60 = vmul.f32 %v962_v56, %v446_v40 }
 0xc5d   :  { %v511_v57 = vpop.permute.xlu1 %510 }
 0xc5e   :  { %v513_v58 = vmul.f32 %v962_v56, %v511_v57 }
 0xc60   :  { %515 = vrot.lane.b32.xlu0 %v513_v58, %s996_s14 }
 0xcd2   :  { %v516_v63 = vpop.permute.xlu0 %515 }
 0xcd3   :  { %v518_v0 = vadd.f32 %v516_v63, %v508_v60 }
 0xcd5   :  { %963 = vtanh.f32 %v518_v0 }
 0xcdf   :  { %v964_v2 = vpop.eup %963 }
 0xce0   :  { %521 = vrot.lane.b32.xlu1 %v964_v2, %s995_s12 }
 0xd52   :  { %v522_v4 = vpop.permute.xlu1 %521 }
 0xd53   :  { %v524_v5 = vmul.f32 %v962_v56, %v522_v4  ;;  %v808_v4 = vld [vmem:[%s1209_s6 + $0x1] ss:$0 sm:$0xff] }
 0xd55   :  { %v525_v7 = vpack.c.bf16 %v524_v5, %v524_v5 }
 0xd57   :  { %527 = vrot.lane.b32.xlu0 %v525_v7, %s996_s14 }
 0xdc9   :  { %v528_v8 = vpop.permute.xlu0 %527 }
 0xdca   :  { %894 = vmatmul.mubr.msk.bf16.vlgmr.msra.gmra.mrb[12].mxu1 %vm164_vm3, %v528_v8 }
 0xdcb   :  { %906 = vmatpush3.bf16.msra.mxu1 %v1047_v3  ;;  %909 = vmatprep.mubr.msk.bf16.mxu1 %vm994_vm2, %v993_v1 }
 0xdcc   :  { %907 = vmatprep.subr.bf16.mxu1 %v993_v1 }
 0xdcf   :  { %908 = vmatpush3.bf16.msra.mxu1 %v1062_v6 }
 0xe9d   :  { %v566_v12 = vpop.f32.mrb[12].mxu1 }
 0xe9e   :  { %v572_v14 = vadd.f32 %v566_v12, %v134_v11  ;;  %v895_v15 = vpop.f32.mrb[13].mxu1 }
 0xe9f   :  { %v569_v16 = vpop.f32.mrb[14].mxu1 }
 0xea0   :  { %965 = vtanh.f32 %v572_v14  ;;  %v896_v17 = vpop.f32.mrb[15].mxu1  ;;  %v802_v3 = vmul.f32 -1.442695, %v572_v14 }
 0xea2   :  { %967 = vpow2.f32 %v802_v3 }
 0xeaa   :  { %v966_v18 = vpop.eup %965 }
 0xeab   :  { %582 = vrot.lane.b32.xlu1 %v966_v18, %s995_s12 }
 0xeac   :  { %v968_v10 = vpop.eup %967 }
 0xead   :  { %v576_v19 = vadd.f32 1.0, %v968_v10 }
 0xeaf   :  { %969 = vrcp.f32 %v576_v19 }
 0xeb9   :  { %v970_v1 = vpop.eup %969 }
 0xeba   :  { %v580_v62 = vmul.f32 %v970_v1, %v518_v0 }
 0xf1d   :  { %v583_v20 = vpop.permute.xlu1 %582 }
 0xf1e   :  { %v585_v6 = vmul.f32 %v970_v1, %v583_v20 }
 0xf20   :  { %587 = vrot.lane.b32.xlu0 %v585_v6, %s996_s14 }
 0xf92   :  { %v588_v21 = vpop.permute.xlu0 %587 }
 0xf93   :  { %v590_v22 = vadd.f32 %v588_v21, %v580_v62 }
 0xf95   :  { %971 = vtanh.f32 %v590_v22 }
 0xf9f   :  { %v972_v23 = vpop.eup %971 }
 0xfa0   :  { %593 = vrot.lane.b32.xlu1 %v972_v23, %s995_s12 }
0x1012   :  { %v594_v24 = vpop.permute.xlu1 %593 }
0x1013   :  { %v596_v25 = vmul.f32 %v970_v1, %v594_v24 }
0x1015   :  { %v597_v26 = vpack.c.bf16 %v596_v25, %v596_v25 }
0x1017   :  { %599 = vrot.lane.b32.xlu0 %v597_v26, %s996_s14 }
0x1089   :  { %v600_v27 = vpop.permute.xlu0 %599 }
0x108a   :  { %902 = vmatmul.mubr.msk.bf16.vlgmr.msra.gmra.mrb[16].mxu0 %vm164_vm3, %v600_v27 }
0x115d   :  { %v638_v29 = vpop.f32.mrb[16].mxu0 }
0x115e   :  { %v644_v30 = vadd.f32 %v638_v29, %v139_v28  ;;  %v903_v31 = vpop.f32.mrb[17].mxu0 }
0x115f   :  { %v641_v32 = vpop.f32.mrb[18].mxu0 }
0x1160   :  { %973 = vtanh.f32 %v644_v30  ;;  %v904_v33 = vpop.f32.mrb[19].mxu0  ;;  %v804_v35 = vmul.f32 -1.442695, %v644_v30 }
0x1162   :  { %975 = vpow2.f32 %v804_v35 }
0x116a   :  { %v974_v34 = vpop.eup %973 }
0x116b   :  { %654 = vrot.lane.b32.xlu1 %v974_v34, %s995_s12 }
0x116c   :  { %v976_v36 = vpop.eup %975 }
0x116d   :  { %v648_v37 = vadd.f32 1.0, %v976_v36 }
0x116f   :  { %977 = vrcp.f32 %v648_v37 }
0x1179   :  { %v978_v38 = vpop.eup %977 }
0x117a   :  { %v652_v59 = vmul.f32 %v978_v38, %v590_v22 }
0x11dd   :  { %v655_v13 = vpop.permute.xlu1 %654 }
0x11de   :  { %v657_v39 = vmul.f32 %v978_v38, %v655_v13 }
0x11e0   :  { %659 = vrot.lane.b32.xlu0 %v657_v39, %s996_s14 }
0x1252   :  { %v660_v40 = vpop.permute.xlu0 %659 }
0x1253   :  { %v662_v41 = vadd.f32 %v660_v40, %v652_v59 }
0x1255   :  { %979 = vtanh.f32 %v662_v41 }
0x125f   :  { %v980_v42 = vpop.eup %979 }
0x1260   :  { %665 = vrot.lane.b32.xlu1 %v980_v42, %s995_s12 }
0x12d2   :  { %v666_v43 = vpop.permute.xlu1 %665 }
0x12d3   :  { %v668_v44 = vmul.f32 %v978_v38, %v666_v43 }
0x12d5   :  { %v669_v45 = vpack.c.bf16 %v668_v44, %v668_v44 }
0x12d7   :  { %671 = vrot.lane.b32.xlu0 %v669_v45, %s996_s14 }
0x1349   :  { %v672_v46 = vpop.permute.xlu0 %671 }
0x134a   :  { %910 = vmatmul.mubr.msk.bf16.vlgmr.msra.gmra.mrb[16].mxu1 %vm164_vm3, %v672_v46 }
0x141d   :  { %v710_v48 = vpop.f32.mrb[16].mxu1 }
0x141e   :  { %v716_v49 = vadd.f32 %v710_v48, %v142_v47  ;;  %v911_v50 = vpop.f32.mrb[17].mxu1 }
0x141f   :  { %v713_v51 = vpop.f32.mrb[18].mxu1 }
0x1420   :  { %981 = vtanh.f32 %v716_v49  ;;  %v912_v52 = vpop.f32.mrb[19].mxu1  ;;  %v806_v54 = vmul.f32 -1.442695, %v716_v49 }
0x1422   :  { %983 = vpow2.f32 %v806_v54 }
0x142a   :  { %v982_v53 = vpop.eup %981 }
0x142b   :  { %726 = vrot.lane.b32.xlu1 %v982_v53, %s995_s12 }
0x142c   :  { %v984_v55 = vpop.eup %983 }
0x142d   :  { %v720_v56 = vadd.f32 1.0, %v984_v55 }
0x142f   :  { %985 = vrcp.f32 %v720_v56 }
0x1439   :  { %v986_v57 = vpop.eup %985 }
0x143a   :  { %v724_v61 = vmul.f32 %v986_v57, %v662_v41 }
0x149d   :  { %v727_v58 = vpop.permute.xlu1 %726 }
0x149e   :  { %v729_v60 = vmul.f32 %v986_v57, %v727_v58 }
0x14a0   :  { %731 = vrot.lane.b32.xlu0 %v729_v60, %s996_s14 }
0x14a4   :  { %747 = vrot.lane.b32.xlu0 %v807_v9, %s997_s19 }
0x1512   :  { %v732_v63 = vpop.permute.xlu0 %731 }
0x1513   :  { %v734_v0 = vadd.f32 %v732_v63, %v724_v61 }
0x1515   :  { %987 = vtanh.f32 %v734_v0 }
0x1516   :  { %v748_v7 = vpop.permute.xlu0 %747 }
0x151f   :  { %v988_v2 = vpop.eup %987 }
0x1520   :  { %737 = vrot.lane.b32.xlu1 %v988_v2, %s995_s12 }
0x1524   :  { %757 = vrot.lane.b32.xlu1 %v808_v4, %s997_s19 }
0x1592   :  { %v738_v5 = vpop.permute.xlu1 %737 }
0x1593   :  { %v740_v8 = vmul.f32 %v986_v57, %v738_v5 }
0x1595   :  { %v750_v11 = vmul.f32 %v748_v7, %v740_v8 }
0x1596   :  { %v758_v12 = vpop.permute.xlu1 %757 }
0x1597   :  { %v760_v14 = vadd.f32 %v758_v12, %v750_v11 }
0x1599   :  { %762 = vrot.lane.b32.xlu0 %v760_v14, %s996_s14 }
0x160b   :  { %v763_v15 = vpop.permute.xlu0 %762 }
0x160c   :  { %v765_v16 = vsel %vm164_vm3, %v763_v15, 0.0 }
0x160d   :  { %766 = vadd.xlane.f32.xlu1 %v765_v16 }
0x169a   :  { %v767_v17 = vpop.xlane.xlu1 %766 }
0x169b   :  { %v809_v18 = vmul.f32 -1.442695, %v767_v17 }
0x169d   :  { %989 = vpow2.f32 %v809_v18 }
0x16a7   :  { %v990_v3 = vpop.eup %989 }
0x16a8   :  { %v771_v10 = vadd.f32 1.0, %v990_v3 }
0x16aa   :  { %991 = vrcp.f32 %v771_v10 }
0x16b4   :  { %v992_v19 = vpop.eup %991 }
0x16b5   :  { %775 = vst.msk [vmem:[%s1210_s7] sm:$0xff] %vm774_vm4, %v992_v19 }

</bundles_post_ra>
